<compile_context>
chip_gen: v6e
topology: v6e:2x2x1
jax: 0.10.0
libtpu: 0.0.40
codegen_flags: <defaults>
</compile_context>

<pallas_src>
import functools

import jax
import jax.numpy as jnp
from jax.experimental import pallas as pl
from jax.experimental.pallas import tpu as pltpu


def _round_up(x, m):
    return (x + m - 1) // m * m


# ---------------------------------------------------------------------------
# Kernel 1: 3x3 conv as a single K-fused MXU matmul per tile (+ conv bias)
#           and per-channel sum / sum-of-squares accumulation for BatchNorm.
# ---------------------------------------------------------------------------
def _conv_stats_kernel(patches_ref, w_ref, b_ref, conv_ref, sum_ref, sq_ref,
                       *, m_valid, tile_m):
    i = pl.program_id(0)

    # Zero the resident per-channel stat accumulators on the first tile.
    @pl.when(i == 0)
    def _():
        sum_ref[...] = jnp.zeros_like(sum_ref)
        sq_ref[...] = jnp.zeros_like(sq_ref)

    # [tile_m, K_pad] @ [K_pad, C_pad]  (bf16 in, f32 accumulate on the MXU).
    acc = jnp.dot(patches_ref[...], w_ref[...], preferred_element_type=jnp.float32)
    acc = acc + b_ref[...]                       # conv bias (f32 epilogue)

    conv_ref[...] = acc                          # pre-BN conv output (f32)

    # Exclude zero-padded rows (beyond the real N*H*W) from the batch statistics.
    row = jax.lax.broadcasted_iota(jnp.int32, acc.shape, 0) + i * tile_m
    acc_m = jnp.where(row < m_valid, acc, 0.0)
    sum_ref[...] += jnp.sum(acc_m, axis=0, keepdims=True)
    sq_ref[...] += jnp.sum(acc_m * acc_m, axis=0, keepdims=True)


# ---------------------------------------------------------------------------
# Kernel 2: BatchNorm apply with pre-folded scale/shift, then ReLU.
# ---------------------------------------------------------------------------
def _bn_relu_kernel(conv_ref, scale_ref, shift_ref, out_ref):
    y = conv_ref[...] * scale_ref[...] + shift_ref[...]
    out_ref[...] = jnp.maximum(y, 0.0).astype(out_ref.dtype)


# ---------------------------------------------------------------------------
# One conv3x3 + BatchNorm2d(training, batch stats) + ReLU stage.
# x_nhwc: [N, H, W, Cin]; w: [3, 3, Cin, Cout]. Returns [N, H, W, Cout].
# ---------------------------------------------------------------------------
def conv_bn_relu_nhwc(x_nhwc, w, b, gamma, beta, *, eps=1e-5, tile_m=256,
                      out_dtype=jnp.float32, vmem_limit=48 * 1024 * 1024):
    N, H, W, Cin = x_nhwc.shape
    Cout = w.shape[-1]
    M = N * H * W
    K = 9 * Cin

    K_pad = _round_up(K, 128)        # lane-dense contraction dim
    C_pad = _round_up(Cout, 128)     # lane-dense output channels
    tile_m = min(tile_m, _round_up(M, 8))
    M_pad = _round_up(M, tile_m)
    num_tiles = M_pad // tile_m

    # im2col patch matrix [M, 9*Cin] in bf16 for the MXU.
    # TODO(synk): build the 3x3 halo in-kernel (manual DMA / overlapping windows) to avoid
    # materializing the 9x patch slab in HBM for large activations.
    xpad = jnp.pad(x_nhwc, ((0, 0), (1, 1), (1, 1), (0, 0)))
    cols = [xpad[:, dh:dh + H, dw:dw + W, :] for dh in range(3) for dw in range(3)]
    patches = jnp.concatenate(cols, axis=-1).reshape(M, K).astype(jnp.bfloat16)
    patches = jnp.pad(patches, ((0, M_pad - M), (0, K_pad - K)))

    wmat = jnp.pad(w.reshape(K, Cout).astype(jnp.bfloat16),
                   ((0, K_pad - K), (0, C_pad - Cout)))
    b_p = jnp.pad(b.astype(jnp.float32), (0, C_pad - Cout)).reshape(1, C_pad)
    g_p = jnp.pad(gamma.astype(jnp.float32), (0, C_pad - Cout)).reshape(1, C_pad)
    be_p = jnp.pad(beta.astype(jnp.float32), (0, C_pad - Cout)).reshape(1, C_pad)

    # Pass 1: conv + bias per tile, plus cross-tile per-channel sum / sumsq.
    conv_out, csum, csq = pl.pallas_call(
        functools.partial(_conv_stats_kernel, m_valid=M, tile_m=tile_m),
        grid=(num_tiles,),
        in_specs=[
            pl.BlockSpec((tile_m, K_pad), lambda i: (i, 0)),
            pl.BlockSpec((K_pad, C_pad), lambda i: (0, 0)),
            pl.BlockSpec((1, C_pad), lambda i: (0, 0)),
        ],
        out_specs=(
            pl.BlockSpec((tile_m, C_pad), lambda i: (i, 0)),
            pl.BlockSpec((1, C_pad), lambda i: (0, 0)),   # resident accumulator
            pl.BlockSpec((1, C_pad), lambda i: (0, 0)),   # resident accumulator
        ),
        out_shape=(
            jax.ShapeDtypeStruct((M_pad, C_pad), jnp.float32),
            jax.ShapeDtypeStruct((1, C_pad), jnp.float32),
            jax.ShapeDtypeStruct((1, C_pad), jnp.float32),
        ),
        compiler_params=pltpu.CompilerParams(
            dimension_semantics=("arbitrary",),   # stats accumulate across tiles
            vmem_limit_bytes=vmem_limit,
        ),
    )(patches, wmat, b_p)

    # Fold BN into one per-channel scale/shift (tiny [C_pad] vector math, f32).
    inv_m = 1.0 / float(M)
    mean = csum * inv_m
    var = jnp.maximum(csq * inv_m - mean * mean, 0.0)   # single-pass biased variance
    scale = g_p * jax.lax.rsqrt(var + eps)
    shift = be_p - mean * scale

    # Pass 2: y = max(conv * scale + shift, 0), fully parallel over tiles.
    y = pl.pallas_call(
        _bn_relu_kernel,
        grid=(num_tiles,),
        in_specs=[
            pl.BlockSpec((tile_m, C_pad), lambda i: (i, 0)),
            pl.BlockSpec((1, C_pad), lambda i: (0, 0)),
            pl.BlockSpec((1, C_pad), lambda i: (0, 0)),
        ],
        out_specs=pl.BlockSpec((tile_m, C_pad), lambda i: (i, 0)),
        out_shape=jax.ShapeDtypeStruct((M_pad, C_pad), out_dtype),
        compiler_params=pltpu.CompilerParams(
            dimension_semantics=("parallel",),
            vmem_limit_bytes=vmem_limit,
        ),
    )(conv_out, scale, shift)

    return y[:M, :Cout].reshape(N, H, W, Cout)


def init_params(key, in_channels, out_channels):
    """Deterministic parameter init (shapes match the PyTorch module's __init__)."""
    k1, k2, k3, k4 = jax.random.split(key, 4)
    fan1 = in_channels * 9
    fan2 = out_channels * 9
    params = {
        "w1": jax.random.normal(k1, (3, 3, in_channels, out_channels), jnp.float32)
              * (1.0 / jnp.sqrt(fan1)),
        "b1": jax.random.normal(k2, (out_channels,), jnp.float32) * 0.1,
        "g1": jnp.ones((out_channels,), jnp.float32),      # bn1.weight
        "beta1": jnp.zeros((out_channels,), jnp.float32),  # bn1.bias
        "w2": jax.random.normal(k3, (3, 3, out_channels, out_channels), jnp.float32)
              * (1.0 / jnp.sqrt(fan2)),
        "b2": jax.random.normal(k4, (out_channels,), jnp.float32) * 0.1,
        "g2": jnp.ones((out_channels,), jnp.float32),
        "beta2": jnp.zeros((out_channels,), jnp.float32),
    }
    return params


@jax.jit
def double_conv2d_bn_forward(x_nchw, params):
    """Matches double_conv2d_bn.forward (training-mode BatchNorm). x_nchw: [N, Cin, H, W]."""
    x = jnp.transpose(x_nchw, (0, 2, 3, 1))  # NCHW -> NHWC
    h = conv_bn_relu_nhwc(x, params["w1"], params["b1"], params["g1"], params["beta1"],
                          out_dtype=jnp.bfloat16)   # intermediate feeds a bf16 matmul anyway
    h = conv_bn_relu_nhwc(h, params["w2"], params["b2"], params["g2"], params["beta2"],
                          out_dtype=jnp.float32)
    return jnp.transpose(h, (0, 3, 1, 2))    # NHWC -> NCHW


def _reference_forward(x_nchw, params, eps=1e-5):
    """Plain-JAX f32 reference (sanity check only)."""
    def conv_bn_relu(x, w, b, g, beta):
        w_oihw = jnp.transpose(w, (3, 2, 0, 1))
        y = jax.lax.conv_general_dilated(
            x, w_oihw, window_strides=(1, 1), padding=((1, 1), (1, 1)),
            dimension_numbers=("NCHW", "OIHW", "NCHW"))
        y = y + b[None, :, None, None]
        mean = jnp.mean(y, axis=(0, 2, 3), keepdims=True)
        var = jnp.mean(jnp.square(y - mean), axis=(0, 2, 3), keepdims=True)
        y = (y - mean) * jax.lax.rsqrt(var + eps)
        y = y * g[None, :, None, None] + beta[None, :, None, None]
        return jnp.maximum(y, 0.0)

    h = conv_bn_relu(x_nchw, params["w1"], params["b1"], params["g1"], params["beta1"])
    h = conv_bn_relu(h, params["w2"], params["b2"], params["g2"], params["beta2"])
    return h


if __name__ == "__main__":
    key = jax.random.PRNGKey(0)
    kx, kp = jax.random.split(key)

    N, Cin, H, W = 2, 4, 16, 16
    Cout = 8

    x = jax.random.normal(kx, (N, Cin, H, W), jnp.float32)
    params = init_params(kp, Cin, Cout)

    out = double_conv2d_bn_forward(x, params)
    out = jax.block_until_ready(out)
    assert out.shape == (N, Cout, H, W), out.shape

    ref = _reference_forward(x, params)
    # bf16 MXU inputs (per perf guidance) => small drift vs the all-f32 reference.
    max_err = float(jnp.max(jnp.abs(out - ref)))
    assert jnp.allclose(out, ref, rtol=5e-2, atol=5e-2), max_err

    print("KERNEL_OK")
</pallas_src>

<mosaic_0001>
module attributes {stable_mosaic.version = 11 : i64} {
  func.func @_bn_relu_kernel(%arg0: i32, %arg1: memref<256x128xf32, #tpu.memory_space<vmem>>, %arg2: memref<1x128xf32, #tpu.memory_space<vmem>>, %arg3: memref<1x128xf32, #tpu.memory_space<vmem>>, %arg4: memref<256x128xbf16, #tpu.memory_space<vmem>>) attributes {dimension_semantics = [#tpu.dimension_semantics<parallel>], iteration_bounds = array<i64: 2>, scalar_prefetch = 0 : i64, scratch_operands = 0 : i64, tpu.core_type = #tpu.core_type<tc>, window_params = [{transform_indices = @transform_0, window_bounds = array<i64: 256, 128>}, {pipeline_mode = #tpu.pipeline_mode<synchronous>, transform_indices = @transform_1, window_bounds = array<i64: 1, 128>}, {pipeline_mode = #tpu.pipeline_mode<synchronous>, transform_indices = @transform_2, window_bounds = array<i64: 1, 128>}, {transform_indices = @transform_3, window_bounds = array<i64: 256, 128>}]} {
    %c0 = arith.constant 0 : index
    %c0_0 = arith.constant 0 : index
    %0 = vector.load %arg1[%c0, %c0_0] : memref<256x128xf32, #tpu.memory_space<vmem>>, vector<256x128xf32>
    %c0_1 = arith.constant 0 : index
    %c0_2 = arith.constant 0 : index
    %1 = vector.load %arg2[%c0_1, %c0_2] : memref<1x128xf32, #tpu.memory_space<vmem>>, vector<1x128xf32>
    %2 = vector.broadcast %1 : vector<1x128xf32> to vector<256x128xf32>
    %3 = arith.mulf %0, %2 : vector<256x128xf32>
    %c0_3 = arith.constant 0 : index
    %c0_4 = arith.constant 0 : index
    %4 = vector.load %arg3[%c0_3, %c0_4] : memref<1x128xf32, #tpu.memory_space<vmem>>, vector<1x128xf32>
    %5 = vector.broadcast %4 : vector<1x128xf32> to vector<256x128xf32>
    %6 = arith.addf %3, %5 : vector<256x128xf32>
    %cst = arith.constant 0.000000e+00 : f32
    %7 = vector.broadcast %cst : f32 to vector<256x128xf32>
    %8 = arith.maximumf %6, %7 : vector<256x128xf32>
    %9 = arith.truncf %8 : vector<256x128xf32> to vector<256x128xbf16>
    %c0_5 = arith.constant 0 : index
    %c0_6 = arith.constant 0 : index
    %10 = vector.load %arg4[%c0_5, %c0_6] : memref<256x128xbf16, #tpu.memory_space<vmem>>, vector<256x128xbf16>
    tpu.vector_store %arg4[%c0_5, %c0_6], %9 {strides = array<i32>} : memref<256x128xbf16, #tpu.memory_space<vmem>>, vector<256x128xbf16>,
    return
  }
  func.func @transform_0(%arg0: i32) -> (i32, i32) {
    %c0_i32 = arith.constant 0 : i32
    %c0_i32_0 = arith.constant 0 : i32
    return %arg0, %c0_i32 : i32, i32
  }
  func.func @transform_1(%arg0: i32) -> (i32, i32) {
    %c0_i32 = arith.constant 0 : i32
    %c0_i32_0 = arith.constant 0 : i32
    %c0_i32_1 = arith.constant 0 : i32
    return %c0_i32, %c0_i32_0 : i32, i32
  }
  func.func @transform_2(%arg0: i32) -> (i32, i32) {
    %c0_i32 = arith.constant 0 : i32
    %c0_i32_0 = arith.constant 0 : i32
    %c0_i32_1 = arith.constant 0 : i32
    return %c0_i32, %c0_i32_0 : i32, i32
  }
  func.func @transform_3(%arg0: i32) -> (i32, i32) {
    %c0_i32 = arith.constant 0 : i32
    %c0_i32_0 = arith.constant 0 : i32
    return %arg0, %c0_i32 : i32, i32
  }
}

module attributes {stable_mosaic.version = 11 : i64} {
  func.func @_conv_stats_kernel(%arg0: i32, %arg1: memref<256x128xbf16, #tpu.memory_space<vmem>>, %arg2: memref<128x128xbf16, #tpu.memory_space<vmem>>, %arg3: memref<1x128xf32, #tpu.memory_space<vmem>>, %arg4: memref<256x128xf32, #tpu.memory_space<vmem>>, %arg5: memref<1x128xf32, #tpu.memory_space<vmem>>, %arg6: memref<1x128xf32, #tpu.memory_space<vmem>>) attributes {dimension_semantics = [#tpu.dimension_semantics<arbitrary>], iteration_bounds = array<i64: 2>, scalar_prefetch = 0 : i64, scratch_operands = 0 : i64, tpu.core_type = #tpu.core_type<tc>, window_params = [{transform_indices = @transform_0, window_bounds = array<i64: 256, 128>}, {pipeline_mode = #tpu.pipeline_mode<synchronous>, transform_indices = @transform_1, window_bounds = array<i64: 128, 128>}, {pipeline_mode = #tpu.pipeline_mode<synchronous>, transform_indices = @transform_2, window_bounds = array<i64: 1, 128>}, {transform_indices = @transform_3, window_bounds = array<i64: 256, 128>}, {pipeline_mode = #tpu.pipeline_mode<synchronous>, transform_indices = @transform_4, window_bounds = array<i64: 1, 128>}, {pipeline_mode = #tpu.pipeline_mode<synchronous>, transform_indices = @transform_5, window_bounds = array<i64: 1, 128>}]} {
    %c0_i32 = arith.constant 0 : i32
    %0 = arith.cmpi eq, %arg0, %c0_i32 : i32
    %1 = arith.extui %0 : i1 to i32
    %c0_i32_0 = arith.constant 0 : i32
    %2 = arith.cmpi ne, %1, %c0_i32_0 : i32
    scf.if %2 {
      %cst_19 = arith.constant 0.000000e+00 : f32
      %29 = vector.broadcast %cst_19 : f32 to vector<1x128xf32>
      %c0_20 = arith.constant 0 : index
      %c0_21 = arith.constant 0 : index
      %30 = vector.load %arg5[%c0_20, %c0_21] : memref<1x128xf32, #tpu.memory_space<vmem>>, vector<1x128xf32>
      tpu.vector_store %arg5[%c0_20, %c0_21], %29 {strides = array<i32>} : memref<1x128xf32, #tpu.memory_space<vmem>>, vector<1x128xf32>,
      %cst_22 = arith.constant 0.000000e+00 : f32
      %31 = vector.broadcast %cst_22 : f32 to vector<1x128xf32>
      %c0_23 = arith.constant 0 : index
      %c0_24 = arith.constant 0 : index
      %32 = vector.load %arg6[%c0_23, %c0_24] : memref<1x128xf32, #tpu.memory_space<vmem>>, vector<1x128xf32>
      tpu.vector_store %arg6[%c0_23, %c0_24], %31 {strides = array<i32>} : memref<1x128xf32, #tpu.memory_space<vmem>>, vector<1x128xf32>,
    } else {
    }
    %c0 = arith.constant 0 : index
    %c0_1 = arith.constant 0 : index
    %3 = vector.load %arg1[%c0, %c0_1] : memref<256x128xbf16, #tpu.memory_space<vmem>>, vector<256x128xbf16>
    %c0_2 = arith.constant 0 : index
    %c0_3 = arith.constant 0 : index
    %4 = vector.load %arg2[%c0_2, %c0_3] : memref<128x128xbf16, #tpu.memory_space<vmem>>, vector<128x128xbf16>
    %cst = arith.constant dense<0.000000e+00> : vector<256x128xf32>
    %5 = tpu.matmul %3, %4, %cst {dimension_numbers = #tpu.dot_dimension_numbers<[1], [0], [0], [1], [0, 0, 1, 1], [], []>} : vector<256x128xbf16>, vector<128x128xbf16>, vector<256x128xf32> -> vector<256x128xf32>
    %c0_4 = arith.constant 0 : index
    %c0_5 = arith.constant 0 : index
    %6 = vector.load %arg3[%c0_4, %c0_5] : memref<1x128xf32, #tpu.memory_space<vmem>>, vector<1x128xf32>
    %7 = vector.broadcast %6 : vector<1x128xf32> to vector<256x128xf32>
    %8 = arith.addf %5, %7 : vector<256x128xf32>
    %c0_6 = arith.constant 0 : index
    %c0_7 = arith.constant 0 : index
    %9 = vector.load %arg4[%c0_6, %c0_7] : memref<256x128xf32, #tpu.memory_space<vmem>>, vector<256x128xf32>
    tpu.vector_store %arg4[%c0_6, %c0_7], %8 {strides = array<i32>} : memref<256x128xf32, #tpu.memory_space<vmem>>, vector<256x128xf32>,
    %10 = tpu.iota {dimensions = array<i32: 0>} : vector<256x128xi32>
    %c256_i32 = arith.constant 256 : i32
    %11 = arith.muli %arg0, %c256_i32 : i32
    %12 = vector.broadcast %11 : i32 to vector<256x128xi32>
    %13 = arith.addi %10, %12 : vector<256x128xi32>
    %c512_i32 = arith.constant 512 : i32
    %14 = vector.broadcast %c512_i32 : i32 to vector<256x128xi32>
    %15 = arith.cmpi slt, %13, %14 : vector<256x128xi32>
    %cst_8 = arith.constant 0.000000e+00 : f32
    %16 = vector.broadcast %cst_8 : f32 to vector<256x128xf32>
    %17 = arith.select %15, %8, %16 : vector<256x128xi1>, vector<256x128xf32>
    %c0_9 = arith.constant 0 : index
    %c0_10 = arith.constant 0 : index
    %18 = vector.load %arg5[%c0_9, %c0_10] : memref<1x128xf32, #tpu.memory_space<vmem>>, vector<1x128xf32>
    %cst_11 = arith.constant dense<0.000000e+00> : vector<128xf32>
    %19 = vector.multi_reduction <add>, %17, %cst_11 [0] : vector<256x128xf32> to vector<128xf32>
    %20 = vector.shape_cast %19 : vector<128xf32> to vector<1x128xf32>
    %21 = arith.addf %18, %20 : vector<1x128xf32>
    %c0_12 = arith.constant 0 : index
    %c0_13 = arith.constant 0 : index
    %22 = vector.load %arg5[%c0_12, %c0_13] : memref<1x128xf32, #tpu.memory_space<vmem>>, vector<1x128xf32>
    tpu.vector_store %arg5[%c0_12, %c0_13], %21 {strides = array<i32>} : memref<1x128xf32, #tpu.memory_space<vmem>>, vector<1x128xf32>,
    %c0_14 = arith.constant 0 : index
    %c0_15 = arith.constant 0 : index
    %23 = vector.load %arg6[%c0_14, %c0_15] : memref<1x128xf32, #tpu.memory_space<vmem>>, vector<1x128xf32>
    %24 = arith.mulf %17, %17 : vector<256x128xf32>
    %cst_16 = arith.constant dense<0.000000e+00> : vector<128xf32>
    %25 = vector.multi_reduction <add>, %24, %cst_16 [0] : vector<256x128xf32> to vector<128xf32>
    %26 = vector.shape_cast %25 : vector<128xf32> to vector<1x128xf32>
    %27 = arith.addf %23, %26 : vector<1x128xf32>
    %c0_17 = arith.constant 0 : index
    %c0_18 = arith.constant 0 : index
    %28 = vector.load %arg6[%c0_17, %c0_18] : memref<1x128xf32, #tpu.memory_space<vmem>>, vector<1x128xf32>
    tpu.vector_store %arg6[%c0_17, %c0_18], %27 {strides = array<i32>} : memref<1x128xf32, #tpu.memory_space<vmem>>, vector<1x128xf32>,
    return
  }
  func.func @transform_0(%arg0: i32) -> (i32, i32) {
    %c0_i32 = arith.constant 0 : i32
    %c0_i32_0 = arith.constant 0 : i32
    return %arg0, %c0_i32 : i32, i32
  }
  func.func @transform_1(%arg0: i32) -> (i32, i32) {
    %c0_i32 = arith.constant 0 : i32
    %c0_i32_0 = arith.constant 0 : i32
    %c0_i32_1 = arith.constant 0 : i32
    return %c0_i32, %c0_i32_0 : i32, i32
  }
  func.func @transform_2(%arg0: i32) -> (i32, i32) {
    %c0_i32 = arith.constant 0 : i32
    %c0_i32_0 = arith.constant 0 : i32
    %c0_i32_1 = arith.constant 0 : i32
    return %c0_i32, %c0_i32_0 : i32, i32
  }
  func.func @transform_3(%arg0: i32) -> (i32, i32) {
    %c0_i32 = arith.constant 0 : i32
    %c0_i32_0 = arith.constant 0 : i32
    return %arg0, %c0_i32 : i32, i32
  }
  func.func @transform_4(%arg0: i32) -> (i32, i32) {
    %c0_i32 = arith.constant 0 : i32
    %c0_i32_0 = arith.constant 0 : i32
    %c0_i32_1 = arith.constant 0 : i32
    return %c0_i32, %c0_i32_0 : i32, i32
  }
  func.func @transform_5(%arg0: i32) -> (i32, i32) {
    %c0_i32 = arith.constant 0 : i32
    %c0_i32_0 = arith.constant 0 : i32
    %c0_i32_1 = arith.constant 0 : i32
    return %c0_i32, %c0_i32_0 : i32, i32
  }
}

module attributes {stable_mosaic.version = 11 : i64} {
  func.func @_bn_relu_kernel(%arg0: i32, %arg1: memref<256x128xf32, #tpu.memory_space<vmem>>, %arg2: memref<1x128xf32, #tpu.memory_space<vmem>>, %arg3: memref<1x128xf32, #tpu.memory_space<vmem>>, %arg4: memref<256x128xf32, #tpu.memory_space<vmem>>) attributes {dimension_semantics = [#tpu.dimension_semantics<parallel>], iteration_bounds = array<i64: 2>, scalar_prefetch = 0 : i64, scratch_operands = 0 : i64, tpu.core_type = #tpu.core_type<tc>, window_params = [{transform_indices = @transform_0, window_bounds = array<i64: 256, 128>}, {pipeline_mode = #tpu.pipeline_mode<synchronous>, transform_indices = @transform_1, window_bounds = array<i64: 1, 128>}, {pipeline_mode = #tpu.pipeline_mode<synchronous>, transform_indices = @transform_2, window_bounds = array<i64: 1, 128>}, {transform_indices = @transform_3, window_bounds = array<i64: 256, 128>}]} {
    %c0 = arith.constant 0 : index
    %c0_0 = arith.constant 0 : index
    %0 = vector.load %arg1[%c0, %c0_0] : memref<256x128xf32, #tpu.memory_space<vmem>>, vector<256x128xf32>
    %c0_1 = arith.constant 0 : index
    %c0_2 = arith.constant 0 : index
    %1 = vector.load %arg2[%c0_1, %c0_2] : memref<1x128xf32, #tpu.memory_space<vmem>>, vector<1x128xf32>
    %2 = vector.broadcast %1 : vector<1x128xf32> to vector<256x128xf32>
    %3 = arith.mulf %0, %2 : vector<256x128xf32>
    %c0_3 = arith.constant 0 : index
    %c0_4 = arith.constant 0 : index
    %4 = vector.load %arg3[%c0_3, %c0_4] : memref<1x128xf32, #tpu.memory_space<vmem>>, vector<1x128xf32>
    %5 = vector.broadcast %4 : vector<1x128xf32> to vector<256x128xf32>
    %6 = arith.addf %3, %5 : vector<256x128xf32>
    %cst = arith.constant 0.000000e+00 : f32
    %7 = vector.broadcast %cst : f32 to vector<256x128xf32>
    %8 = arith.maximumf %6, %7 : vector<256x128xf32>
    %c0_5 = arith.constant 0 : index
    %c0_6 = arith.constant 0 : index
    %9 = vector.load %arg4[%c0_5, %c0_6] : memref<256x128xf32, #tpu.memory_space<vmem>>, vector<256x128xf32>
    tpu.vector_store %arg4[%c0_5, %c0_6], %8 {strides = array<i32>} : memref<256x128xf32, #tpu.memory_space<vmem>>, vector<256x128xf32>,
    return
  }
  func.func @transform_0(%arg0: i32) -> (i32, i32) {
    %c0_i32 = arith.constant 0 : i32
    %c0_i32_0 = arith.constant 0 : i32
    return %arg0, %c0_i32 : i32, i32
  }
  func.func @transform_1(%arg0: i32) -> (i32, i32) {
    %c0_i32 = arith.constant 0 : i32
    %c0_i32_0 = arith.constant 0 : i32
    %c0_i32_1 = arith.constant 0 : i32
    return %c0_i32, %c0_i32_0 : i32, i32
  }
  func.func @transform_2(%arg0: i32) -> (i32, i32) {
    %c0_i32 = arith.constant 0 : i32
    %c0_i32_0 = arith.constant 0 : i32
    %c0_i32_1 = arith.constant 0 : i32
    return %c0_i32, %c0_i32_0 : i32, i32
  }
  func.func @transform_3(%arg0: i32) -> (i32, i32) {
    %c0_i32 = arith.constant 0 : i32
    %c0_i32_0 = arith.constant 0 : i32
    return %arg0, %c0_i32 : i32, i32
  }
}

</mosaic_0001>

<bundles_post_ra>
// kernel: double_conv2d_bn_forward.5
= control target key start
LH: loop header
LB: loop body
LE: loop exit
PB: predicated region body
PF: predicated region fallthrough
CT: control target
= control target key end

     0   :  { %s740_s12 = smov 0   ;;  %s887_s0 = inlined_call_operand.vmem [shape: f32[512,128], index: 0, kind: input, shape index: {}]   ;;  %s888_s1 = inlined_call_operand.vmem [shape: f32[1,128], index: 1, kind: input, shape index: {}]   ;;  %s889_s2 = inlined_call_operand.vmem [shape: f32[1,128], index: 2, kind: input, shape index: {}]   ;;  %s890_s3 = inlined_call_operand.vmem [shape: bf16[512,128], index: 3, kind: output, shape index: {}]  }
   0x1 LB: > { %s532_s13 = sadd.s32 4294967295, %s718_s12   ;;  %p536_p0 = scmp.ge.s32.totalorder %s718_s12, 1  ;;  %s718_s12 = sphi %s740_s12, %s13_s12  }
   0x2   : > { %p138_p1 = scmp.lt.s32.totalorder %s718_s12, 3 }
   0x4   : > { %p139_p2 = pnand %p536_p0, %p138_p1 }
   0x5   : > { %s537_s14 = sshll.u32 (!%p139_p2), %s532_s13, 5 }
   0x6   : > { %142 = sbr.rel (%p139_p2) target bundleno = 49 (0x31), region = 32  ;;  %p163_p3 = scmp.lt.s32.totalorder (!%p139_p2), %s537_s14, 63 }
   0xb   : > { %s892_s14 = smov (!%p163_p3, %s537_s14), 63  ;;  %v754_v0 = vld [vmem:[%s888_s1] ss:$0 sm:$0xff] }
   0xc   : > { %s538_s15 = sshll.u32 %s892_s14, 3  ;;  %v764_v1 = vld [vmem:[%s889_s2] ss:$0 sm:$0xff]  ;;  %s540_s23 = sshll.u32 %s892_s14, 2 }
   0xd   : > { %s759_s20 = scalar_lea.vmem %s887_s0, %s538_s15  ;;  %s796_s26 = scalar_lea.vmem %s890_s3, %s540_s23 }
   0xe   : > { %v174_v2 = vld [vmem:[%s759_s20] sm:$0xff]  ;;  %v175_v3 = vld [vmem:[%s759_s20 + $0x8] sm:$0xff]  ;;  %v176_v4 = vld [vmem:[%s759_s20 + $0x10] sm:$0xff] }
   0xf   : > { %v213_v5 = vmul.f32 %v754_v0, %v174_v2  ;;  %v214_v6 = vmul.f32 %v754_v0, %v175_v3  ;;  %v177_v7 = vld [vmem:[%s759_s20 + $0x18] sm:$0xff]  ;;  %v215_v8 = vmul.f32 %v754_v0, %v176_v4  ;;  %v178_v9 = vld [vmem:[%s759_s20 + $0x20] sm:$0xff]  ;;  %v179_v10 = vld [vmem:[%s759_s20 + $0x28] sm:$0xff] }
  0x10   : > { %v216_v11 = vmul.f32 %v754_v0, %v177_v7  ;;  %v217_v12 = vmul.f32 %v754_v0, %v178_v9  ;;  %v218_v13 = vmul.f32 %v754_v0, %v179_v10  ;;  %v180_v14 = vld [vmem:[%s759_s20 + $0x30] sm:$0xff]  ;;  %v181_v15 = vld [vmem:[%s759_s20 + $0x38] sm:$0xff]  ;;  %v182_v24 = vld [vmem:[%s759_s20 + $0x40] sm:$0xff] }
  0x11   : > { %v252_v16 = vadd.f32 %v764_v1, %v213_v5  ;;  %v253_v17 = vadd.f32 %v764_v1, %v214_v6  ;;  %v254_v18 = vadd.f32 %v764_v1, %v215_v8  ;;  %v219_v19 = vmul.f32 %v754_v0, %v180_v14  ;;  %v183_v25 = vld [vmem:[%s759_s20 + $0x48] sm:$0xff]  ;;  %v184_v30 = vld [vmem:[%s759_s20 + $0x50] sm:$0xff]  ;;  %v185_v35 = vld [vmem:[%s759_s20 + $0x58] sm:$0xff] }
  0x12   : > { %v255_v20 = vadd.f32 %v764_v1, %v216_v11  ;;  %v256_v21 = vadd.f32 %v764_v1, %v217_v12  ;;  %v257_v22 = vadd.f32 %v764_v1, %v218_v13  ;;  %v220_v23 = vmul.f32 %v754_v0, %v181_v15  ;;  %v186_v36 = vld [vmem:[%s759_s20 + $0x60] sm:$0xff]  ;;  %v187_v41 = vld [vmem:[%s759_s20 + $0x68] sm:$0xff]  ;;  %v188_v42 = vld [vmem:[%s759_s20 + $0x70] sm:$0xff] }
  0x13   : > { %v284_v26 = vmax.f32 %v252_v16, 0.0  ;;  %v285_v27 = vmax.f32 %v253_v17, 0.0  ;;  %v286_v28 = vmax.f32 %v254_v18, 0.0  ;;  %v258_v29 = vadd.f32 %v764_v1, %v219_v19  ;;  %v189_v51 = vld [vmem:[%s759_s20 + $0x78] sm:$0xff]  ;;  %v190_v56 = vld [vmem:[%s759_s20 + $0x80] sm:$0xff]  ;;  %v191_v61 = vld [vmem:[%s759_s20 + $0x88] sm:$0xff] }
  0x14   : > { %v287_v31 = vmax.f32 %v255_v20, 0.0  ;;  %v288_v32 = vmax.f32 %v256_v21, 0.0  ;;  %v289_v33 = vmax.f32 %v257_v22, 0.0  ;;  %v259_v34 = vadd.f32 %v764_v1, %v220_v23  ;;  %v192_v4 = vld [vmem:[%s759_s20 + $0x90] sm:$0xff]  ;;  %v193_v5 = vld [vmem:[%s759_s20 + $0x98] sm:$0xff]  ;;  %v194_v10 = vld [vmem:[%s759_s20 + $0xa0] sm:$0xff] }
  0x15   : > { %v612_v37 = vpack.c.bf16 %v285_v27, %v284_v26  ;;  %v290_v38 = vmax.f32 %v258_v29, 0.0  ;;  %v221_v39 = vmul.f32 %v754_v0, %v182_v24  ;;  %v222_v40 = vmul.f32 %v754_v0, %v183_v25  ;;  %v195_v15 = vld [vmem:[%s759_s20 + $0xa8] sm:$0xff]  ;;  %v196_v20 = vld [vmem:[%s759_s20 + $0xb0] sm:$0xff]  ;;  %v197_v25 = vld [vmem:[%s759_s20 + $0xb8] sm:$0xff] }
  0x16   : > { %v617_v43 = vpack.c.bf16 %v287_v31, %v286_v28  ;;  %v622_v44 = vpack.c.bf16 %v289_v33, %v288_v32  ;;  %v291_v45 = vmax.f32 %v259_v34, 0.0  ;;  %v223_v46 = vmul.f32 %v754_v0, %v184_v30  ;;  %v198_v30 = vld [vmem:[%s759_s20 + $0xc0] sm:$0xff] }
  0x17   : > { %613 = vst [vmem:[%s796_s26] sm:$0xff] %v612_v37   ;;  %v260_v47 = vadd.f32 %v764_v1, %v221_v39  ;;  %v261_v48 = vadd.f32 %v764_v1, %v222_v40  ;;  %v224_v49 = vmul.f32 %v754_v0, %v185_v35  ;;  %v225_v50 = vmul.f32 %v754_v0, %v186_v36  ;;  %v199_v35 = vld [vmem:[%s759_s20 + $0xc8] sm:$0xff]  ;;  %v200_v40 = vld [vmem:[%s759_s20 + $0xd0] sm:$0xff] }
  0x18   : > { %689 = vst [vmem:[%s796_s26 + $0x8] sm:$0xff] %v617_v43   ;;  %690 = vst [vmem:[%s796_s26 + $0x10] sm:$0xff] %v622_v44   ;;  %v627_v52 = vpack.c.bf16 %v291_v45, %v290_v38  ;;  %v262_v53 = vadd.f32 %v764_v1, %v223_v46  ;;  %v226_v54 = vmul.f32 %v754_v0, %v187_v41  ;;  %v201_v41 = vld [vmem:[%s759_s20 + $0xd8] sm:$0xff]  ;;  %v202_v46 = vld [vmem:[%s759_s20 + $0xe0] sm:$0xff] }
  0x19   : > { %v227_v55 = vmul.f32 %v754_v0, %v188_v42  ;;  %v292_v57 = vmax.f32 %v260_v47, 0.0  ;;  %v293_v58 = vmax.f32 %v261_v48, 0.0  ;;  %v263_v59 = vadd.f32 %v764_v1, %v224_v49 }
  0x1a   : > { %v264_v60 = vadd.f32 %v764_v1, %v225_v50  ;;  %691 = vst [vmem:[%s796_s26 + $0x18] sm:$0xff] %v627_v52   ;;  %v294_v62 = vmax.f32 %v262_v53, 0.0  ;;  %v265_v63 = vadd.f32 %v764_v1, %v226_v54  ;;  %v228_v2 = vmul.f32 %v754_v0, %v189_v51  ;;  %v203_v51 = vld [vmem:[%s759_s20 + $0xe8] sm:$0xff] }
  0x1b   : > { %v266_v3 = vadd.f32 %v764_v1, %v227_v55  ;;  %v632_v6 = vpack.c.bf16 %v293_v58, %v292_v57  ;;  %v295_v7 = vmax.f32 %v263_v59, 0.0  ;;  %v229_v9 = vmul.f32 %v754_v0, %v190_v56  ;;  %v204_v56 = vld [vmem:[%s759_s20 + $0xf0] sm:$0xff] }
  0x1c   : > { %v296_v8 = vmax.f32 %v264_v60, 0.0  ;;  %v297_v11 = vmax.f32 %v265_v63, 0.0  ;;  %v267_v12 = vadd.f32 %v764_v1, %v228_v2  ;;  %v230_v14 = vmul.f32 %v754_v0, %v191_v61  ;;  %v205_v61 = vld [vmem:[%s759_s20 + $0xf8] sm:$0xff] }
  0x1d   : > { %v298_v13 = vmax.f32 %v266_v3, 0.0  ;;  %692 = vst [vmem:[%s796_s26 + $0x20] sm:$0xff] %v632_v6   ;;  %v637_v16 = vpack.c.bf16 %v295_v7, %v294_v62  ;;  %v268_v17 = vadd.f32 %v764_v1, %v229_v9  ;;  %v231_v18 = vmul.f32 %v754_v0, %v192_v4 }
  0x1e   : > { %v232_v19 = vmul.f32 %v754_v0, %v193_v5  ;;  %v642_v21 = vpack.c.bf16 %v297_v11, %v296_v8  ;;  %v299_v22 = vmax.f32 %v267_v12, 0.0  ;;  %v269_v23 = vadd.f32 %v764_v1, %v230_v14 }
  0x1f   : > { %v233_v24 = vmul.f32 %v754_v0, %v194_v10  ;;  %693 = vst [vmem:[%s796_s26 + $0x28] sm:$0xff] %v637_v16   ;;  %v300_v26 = vmax.f32 %v268_v17, 0.0  ;;  %v270_v27 = vadd.f32 %v764_v1, %v231_v18  ;;  %v234_v29 = vmul.f32 %v754_v0, %v195_v15 }
  0x20   : > { %v271_v28 = vadd.f32 %v764_v1, %v232_v19  ;;  %694 = vst [vmem:[%s796_s26 + $0x30] sm:$0xff] %v642_v21   ;;  %v647_v31 = vpack.c.bf16 %v299_v22, %v298_v13  ;;  %v301_v32 = vmax.f32 %v269_v23, 0.0  ;;  %v235_v34 = vmul.f32 %v754_v0, %v196_v20 }
  0x21   : > { %v272_v33 = vadd.f32 %v764_v1, %v233_v24  ;;  %v302_v36 = vmax.f32 %v270_v27, 0.0  ;;  %v273_v38 = vadd.f32 %v764_v1, %v234_v29  ;;  %v236_v39 = vmul.f32 %v754_v0, %v197_v25 }
  0x22   : > { %v303_v37 = vmax.f32 %v271_v28, 0.0  ;;  %695 = vst [vmem:[%s796_s26 + $0x38] sm:$0xff] %v647_v31   ;;  %v652_v42 = vpack.c.bf16 %v301_v32, %v300_v26  ;;  %v274_v44 = vadd.f32 %v764_v1, %v235_v34  ;;  %v237_v45 = vmul.f32 %v754_v0, %v198_v30 }
  0x23   : > { %v304_v43 = vmax.f32 %v272_v33, 0.0  ;;  %v305_v48 = vmax.f32 %v273_v38, 0.0  ;;  %v275_v49 = vadd.f32 %v764_v1, %v236_v39  ;;  %v238_v50 = vmul.f32 %v754_v0, %v199_v35 }
  0x24   : > { %v657_v47 = vpack.c.bf16 %v303_v37, %v302_v36  ;;  %696 = vst [vmem:[%s796_s26 + $0x40] sm:$0xff] %v652_v42   ;;  %v306_v52 = vmax.f32 %v274_v44, 0.0  ;;  %v276_v53 = vadd.f32 %v764_v1, %v237_v45  ;;  %v239_v54 = vmul.f32 %v754_v0, %v200_v40 }
  0x25   : > { %v240_v55 = vmul.f32 %v754_v0, %v201_v41  ;;  %v662_v57 = vpack.c.bf16 %v305_v48, %v304_v43  ;;  %v307_v58 = vmax.f32 %v275_v49, 0.0  ;;  %v277_v59 = vadd.f32 %v764_v1, %v238_v50 }
  0x26   : > { %697 = vst [vmem:[%s796_s26 + $0x48] sm:$0xff] %v657_v47   ;;  %v241_v60 = vmul.f32 %v754_v0, %v202_v46  ;;  %v308_v62 = vmax.f32 %v276_v53, 0.0  ;;  %v278_v63 = vadd.f32 %v764_v1, %v239_v54  ;;  %v242_v3 = vmul.f32 %v754_v0, %v203_v51 }
  0x27   : > { %v279_v2 = vadd.f32 %v764_v1, %v240_v55  ;;  %698 = vst [vmem:[%s796_s26 + $0x50] sm:$0xff] %v662_v57   ;;  %v667_v4 = vpack.c.bf16 %v307_v58, %v306_v52  ;;  %v309_v5 = vmax.f32 %v277_v59, 0.0  ;;  %v243_v7 = vmul.f32 %v754_v0, %v204_v56 }
  0x28   : > { %v280_v6 = vadd.f32 %v764_v1, %v241_v60  ;;  %v310_v8 = vmax.f32 %v278_v63, 0.0  ;;  %v281_v10 = vadd.f32 %v764_v1, %v242_v3  ;;  %v244_v11 = vmul.f32 %v754_v0, %v205_v61 }
  0x29   : > { %v311_v9 = vmax.f32 %v279_v2, 0.0  ;;  %699 = vst [vmem:[%s796_s26 + $0x58] sm:$0xff] %v667_v4   ;;  %v672_v12 = vpack.c.bf16 %v309_v5, %v308_v62  ;;  %v282_v14 = vadd.f32 %v764_v1, %v243_v7 }
  0x2a   : > { %v312_v13 = vmax.f32 %v280_v6, 0.0  ;;  %v313_v16 = vmax.f32 %v281_v10, 0.0  ;;  %v283_v17 = vadd.f32 %v764_v1, %v244_v11 }
  0x2b   : > { %v677_v15 = vpack.c.bf16 %v311_v9, %v310_v8  ;;  %700 = vst [vmem:[%s796_s26 + $0x60] sm:$0xff] %v672_v12   ;;  %v314_v18 = vmax.f32 %v282_v14, 0.0 }
  0x2c   : > { %v682_v19 = vpack.c.bf16 %v313_v16, %v312_v13  ;;  %v315_v20 = vmax.f32 %v283_v17, 0.0 }
  0x2d   : > { %701 = vst [vmem:[%s796_s26 + $0x68] sm:$0xff] %v677_v15  }
  0x2e   : > { %702 = vst [vmem:[%s796_s26 + $0x70] sm:$0xff] %v682_v19   ;;  %v687_v21 = vpack.c.bf16 %v315_v20, %v314_v18 }
  0x30   : > { %703 = vst [vmem:[%s796_s26 + $0x78] sm:$0xff] %v687_v21  }
  0x31 PF: > { %s13_s12 = sadd.s32 1, %s718_s12  }
  0x32   : > { %p10_p4 = scmp.ge.s32.totalorder %s13_s12, 4  }
  0x34   :  { %12 = sbr.rel (!%p10_p4) target bundleno = 1 (0x1), region = 62 }

// kernel: double_conv2d_bn_forward.4
= control target key start
LH: loop header
LB: loop body
LE: loop exit
PB: predicated region body
PF: predicated region fallthrough
CT: control target
= control target key end

     0   :  { %s1131_s18 = smov 0   ;;  %s1467_s0 = inlined_call_operand.vmem [shape: bf16[512,128], index: 0, kind: input, shape index: {}]   ;;  %s1468_s1 = inlined_call_operand.vmem [shape: bf16[128,128], index: 1, kind: input, shape index: {}]   ;;  %s1469_s2 = inlined_call_operand.vmem [shape: f32[1,128], index: 2, kind: input, shape index: {}]   ;;  %s1470_s3 = inlined_call_operand.vmem [shape: f32[512,128], index: 3, kind: output, shape index: {0}]   ;;  %s1471_s4 = inlined_call_operand.vmem [shape: f32[1,128], index: 4, kind: output, shape index: {1}]   ;;  %s1472_s5 = inlined_call_operand.vmem [shape: f32[1,128], index: 5, kind: output, shape index: {2}]  }
   0x1 LB: > { %s1137_s19 = sadd.s32 4294967295, %s1098_s18   ;;  %p937_p0 = scmp.ge.s32.totalorder %s1098_s18, 1  ;;  %s1098_s18 = sphi %s1131_s18, %s16_s18  }
   0x2   : > { %p183_p1 = scmp.lt.s32.totalorder %s1098_s18, 3 }
   0x4   : > { %p184_p2 = pnand %p937_p0, %p183_p1 }
   0x5   : > { %s938_s20 = sshll.u32 (!%p184_p2), %s1137_s19, 5  ;;  %p942_p4 = scmp.ne.s32.totalorder (!%p184_p2), %s1137_s19, 0 }
   0x6   : > { %187 = sbr.rel (%p184_p2) target bundleno = 332 (0x14c), region = 32  ;;  %p212_p3 = scmp.lt.s32.totalorder (!%p184_p2), %s938_s20, 63 }
   0xb   : > { %s1474_s20 = smov (!%p212_p3, %s938_s20), 63  ;;  %227 = sbr.rel (%p942_p4) target bundleno = 18 (0x12), region = 36 }
   0xc   : > { %s939_s21 = sshll.u32 %s1474_s20, 2  ;;  %s941_s22 = sshll.u32 %s1474_s20, 3 }
   0xd   : > { %s1145_s25 = scalar_lea.vmem %s1467_s0, %s939_s21  ;;  %s1150_s28 = scalar_lea.vmem %s1470_s3, %s941_s22 }
  0x10   : > { %v1100_v0 = vmov 0.0  }
  0x11   : > { %228 = vst [vmem:[%s1471_s4] sm:$0x1] %v1100_v0  ;;  %229 = vst [vmem:[%s1472_s5] sm:$0x1] %v1100_v0 }
  0x12 PF: > { %v1068_v1 = vld [vmem:[%s1468_s1 + $0x38] sm:$0xff]   ;;  %v1069_v2 = vld [vmem:[%s1468_s1 + $0x30] sm:$0xff]   ;;  %v1070_v3 = vld [vmem:[%s1468_s1 + $0x28] sm:$0xff]   ;;  %v622_v25 = vlaneseq  ;;  %s968_s27 = sshll.u32 %s1137_s19, 8 }
  0x13   : > { %995 = vmatprep.subr.bf16.mxu0 %v1068_v1  ;;  %1043 = vmatprep.subr.bf16.mxu1 %v1068_v1  ;;  %v1071_v4 = vld [vmem:[%s1468_s1 + $0x20] sm:$0xff]   ;;  %v1072_v6 = vld [vmem:[%s1468_s1 + $0x18] sm:$0xff]   ;;  %v1073_v7 = vld [vmem:[%s1468_s1 + $0x10] sm:$0xff]   ;;  %v1208_v29 = vstv %s968_s27 }
  0x14   : > { %996 = vmatpush3.bf16.msra.mxu0 %v1068_v1  ;;  %1051 = vmatpush3.bf16.msra.mxu1 %v1068_v1  ;;  %v1076_v5 = vld [vmem:[%s1145_s25] sm:$0xff]   ;;  %v1074_v9 = vld [vmem:[%s1468_s1 + $0x8] sm:$0xff]   ;;  %v1078_v13 = vld [vmem:[%s1145_s25 + $0x10] sm:$0xff]   ;;  %v1199_v26 = vshrl.u32 %v622_v25, 7 }
  0x15   : > { %997 = vmatprep.subr.bf16.mxu0 %v1069_v2  ;;  %1044 = vmatprep.subr.bf16.mxu1 %v1069_v2  ;;  %v1084_v8 = vld [vmem:[%s1145_s25 + $0x40] sm:$0xff]   ;;  %v1077_v11 = vld [vmem:[%s1145_s25 + $0x8] sm:$0xff]   ;;  %v1086_v14 = vld [vmem:[%s1145_s25 + $0x50] sm:$0xff]  }
  0x16   : > { %1011 = vmatprep.mubr.bf16.mxu0 %v1076_v5  ;;  %1027 = vmatprep.mubr.bf16.mxu1 %v1084_v8  ;;  %v1075_v10 = vld [vmem:[%s1468_s1] sm:$0xff]   ;;  %v1085_v12 = vld [vmem:[%s1145_s25 + $0x48] sm:$0xff]   ;;  %v1079_v15 = vld [vmem:[%s1145_s25 + $0x18] sm:$0xff]   ;;  %v625_v27 = vadd.s32 16, %v1199_v26  ;;  %v626_v30 = vadd.s32 24, %v1199_v26  ;;  %v624_v31 = vadd.s32 8, %v1199_v26  ;;  %v657_v33 = vadd.s32 %v1208_v29, %v1199_v26 }
  0x17   : > { %v1087_v16 = vld [vmem:[%s1145_s25 + $0x58] sm:$0xff]   ;;  %v1080_v17 = vld [vmem:[%s1145_s25 + $0x20] sm:$0xff]   ;;  %v1081_v19 = vld [vmem:[%s1145_s25 + $0x28] sm:$0xff]   ;;  %v629_v32 = vadd.s32 48, %v1199_v26  ;;  %v627_v34 = vadd.s32 32, %v1199_v26  ;;  %v630_v36 = vadd.s32 56, %v1199_v26 }
  0x18   : > { %998 = vmatpush3.bf16.msra.mxu0 %v1069_v2  ;;  %1052 = vmatpush3.bf16.msra.mxu1 %v1069_v2  ;;  %v1088_v18 = vld [vmem:[%s1145_s25 + $0x60] sm:$0xff]   ;;  %v1089_v20 = vld [vmem:[%s1145_s25 + $0x68] sm:$0xff]   ;;  %v1082_v21 = vld [vmem:[%s1145_s25 + $0x30] sm:$0xff]   ;;  %v628_v37 = vadd.s32 40, %v1199_v26  ;;  %v659_v41 = vadd.s32 %v1208_v29, %v625_v27  ;;  %v660_v43 = vadd.s32 %v1208_v29, %v626_v30  ;;  %v658_v44 = vadd.s32 %v1208_v29, %v624_v31 }
  0x19   : > { %999 = vmatprep.subr.bf16.mxu0 %v1070_v3  ;;  %1045 = vmatprep.subr.bf16.mxu1 %v1070_v3  ;;  %v1090_v22 = vld [vmem:[%s1145_s25 + $0x70] sm:$0xff]   ;;  %v1083_v23 = vld [vmem:[%s1145_s25 + $0x38] sm:$0xff]   ;;  %v1206_v28 = vld [vmem:[%s1469_s2] ss:$0 sm:$0xff]  ;;  %v1226_v45 = vadd.s32 %v1208_v29, %v629_v32  ;;  %vm689_vm0 = vcmp.lt.s32.totalorder %v657_v33, 512  ;;  %v661_v48 = vadd.s32 %v1208_v29, %v627_v34  ;;  %v1237_v51 = vadd.s32 %v1208_v29, %v630_v36 }
  0x1a   : > { %v1091_v24 = vld [vmem:[%s1145_s25 + $0x78] sm:$0xff]   ;;  %v1240_v52 = vadd.s32 %v1208_v29, %v628_v37  ;;  %v633_v53 = vadd.s32 80, %v1199_v26  ;;  %v631_v54 = vadd.s32 64, %v1199_v26  ;;  %vm691_vm1 = vcmp.lt.s32.totalorder %v659_v41, 512 }
  0x1b   : > { %vm692_vm2 = vcmp.lt.s32.totalorder %v660_v43, 512  ;;  %vm690_vm3 = vcmp.lt.s32.totalorder %v658_v44, 512  ;;  %vm695_vm4 = vcmp.lt.s32.totalorder %v1226_v45, 512  ;;  %vm693_vm5 = vcmp.lt.s32.totalorder %v661_v48, 512 }
  0x1c   : > { %1000 = vmatpush3.bf16.msra.mxu0 %v1070_v3  ;;  %1053 = vmatpush3.bf16.msra.mxu1 %v1070_v3  ;;  %vm696_vm6 = vcmp.lt.s32.totalorder %v1237_v51, 512  ;;  %vm694_vm7 = vcmp.lt.s32.totalorder %v1240_v52, 512  ;;  %v1263_v0 = vadd.s32 %v1208_v29, %v633_v53  ;;  %v1266_v1 = vadd.s32 %v1208_v29, %v631_v54 }
  0x1d   : > { %1001 = vmatprep.subr.bf16.mxu0 %v1071_v4  ;;  %1046 = vmatprep.subr.bf16.mxu1 %v1071_v4  ;;  %v635_v33 = vadd.s32 96, %v1199_v26 }
  0x1e   : > { %vm697_vm8 = vcmp.lt.s32.totalorder %v1266_v1, 512  ;;  %vm699_vm9 = vcmp.lt.s32.totalorder %v1263_v0, 512 }
  0x1f   : > { %v1325_v45 = vadd.s32 %v1208_v29, %v635_v33 }
  0x20   : > { %1002 = vmatpush3.bf16.msra.mxu0 %v1071_v4  ;;  %1054 = vmatpush3.bf16.msra.mxu1 %v1071_v4 }
  0x21   : > { %1003 = vmatprep.subr.bf16.mxu0 %v1072_v6  ;;  %1047 = vmatprep.subr.bf16.mxu1 %v1072_v6  ;;  %vm701_vm13 = vcmp.lt.s32.totalorder %v1325_v45, 512 }
  0x24   : > { %1004 = vmatpush3.bf16.msra.mxu0 %v1072_v6  ;;  %1055 = vmatpush3.bf16.msra.mxu1 %v1072_v6 }
  0x25   : > { %1005 = vmatprep.subr.bf16.mxu0 %v1073_v7  ;;  %1048 = vmatprep.subr.bf16.mxu1 %v1073_v7 }
  0x28   : > { %1006 = vmatpush3.bf16.msra.mxu0 %v1073_v7  ;;  %1056 = vmatpush3.bf16.msra.mxu1 %v1073_v7 }
  0x29   : > { %1007 = vmatprep.subr.bf16.mxu0 %v1074_v9  ;;  %1049 = vmatprep.subr.bf16.mxu1 %v1074_v9 }
  0x2c   : > { %1008 = vmatpush3.bf16.msra.mxu0 %v1074_v9  ;;  %1057 = vmatpush3.bf16.msra.mxu1 %v1074_v9 }
  0x2d   : > { %1009 = vmatprep.subr.bf16.mxu0 %v1075_v10  ;;  %1050 = vmatprep.subr.bf16.mxu1 %v1075_v10 }
  0x30   : > { %1010 = vmatpush3.bf16.msra.mxu0 %v1075_v10  ;;  %1058 = vmatpush3.bf16.msra.mxu1 %v1075_v10 }
  0x33   : > { %1012 = vmatmul.mubr.bf16.vlgmr.msra.gmra.mxu0 %v1077_v11  ;;  %1028 = vmatmul.mubr.bf16.vlgmr.msra.gmra.mxu1 %v1085_v12  ;;  %v634_v11 = vadd.s32 88, %v1199_v26 }
  0x34   : > { %1015 = vmatprep.mubr.bf16.mxu0 %v1078_v13  ;;  %1031 = vmatprep.mubr.bf16.mxu1 %v1086_v14 }
  0x35   : > { %v1302_v36 = vadd.s32 %v1208_v29, %v634_v11 }
  0x37   : > { %vm700_vm10 = vcmp.lt.s32.totalorder %v1302_v36, 512 }
  0x3b   : > { %1016 = vmatmul.mubr.bf16.gmra.mxu0 %v1079_v15  ;;  %1032 = vmatmul.mubr.bf16.gmra.mxu1 %v1087_v16  ;;  %v632_v15 = vadd.s32 72, %v1199_v26 }
  0x3c   : > { %1019 = vmatprep.mubr.bf16.mxu0 %v1080_v17  ;;  %1035 = vmatprep.mubr.bf16.mxu1 %v1088_v18 }
  0x3d   : > { %v666_v37 = vadd.s32 %v1208_v29, %v632_v15 }
  0x3f   : > { %vm698_vm11 = vcmp.lt.s32.totalorder %v666_v37, 512 }
  0x43   : > { %1020 = vmatmul.mubr.bf16.gmra.mxu0 %v1081_v19  ;;  %1036 = vmatmul.mubr.bf16.gmra.mxu1 %v1089_v20 }
  0x44   : > { %1023 = vmatprep.mubr.bf16.mxu0 %v1082_v21  ;;  %1039 = vmatprep.mubr.bf16.mxu1 %v1090_v22  ;;  %v637_v21 = vadd.s32 112, %v1199_v26 }
  0x46   : > { %v1311_v44 = vadd.s32 %v1208_v29, %v637_v21 }
  0x48   : > { %vm703_vm12 = vcmp.lt.s32.totalorder %v1311_v44, 512 }
  0x4b   : > { %1024 = vmatmul.mubr.bf16.gmra.mxu0 %v1083_v23  ;;  %1040 = vmatmul.mubr.bf16.gmra.mxu1 %v1091_v24 }
  0xf3   : > { %v1013_v35 = vpop.f32.mrf.mxu0  ;;  %v1029_v38 = vpop.f32.mrf.mxu1 }
  0xf4   : > { %v472_v39 = vadd.f32 %v1013_v35, %v1206_v28  ;;  %v1220_v40 = vadd.f32 %v1029_v38, %v1206_v28 }
  0xf5   : > { %v463_v42 = vpop.f32.mrf.mxu0  ;;  %v527_v46 = vpop.f32.mrf.mxu1 }
  0xf6   : > { %592 = vst [vmem:[%s1150_s28 + $0x10] sm:$0xff] %v472_v39  ;;  %v464_v47 = vadd.f32 %v1206_v28, %v463_v42  ;;  %608 = vst [vmem:[%s1150_s28 + $0x90] sm:$0xff] %v1220_v40  ;;  %v1234_v49 = vadd.f32 %v1206_v28, %v527_v46  ;;  %v723_v3 = vsel %vm691_vm1, %v472_v39, 0.0 }
  0xf7   : > { %v1014_v50 = vpop.f32.mrf.mxu0  ;;  %v1030_v55 = vpop.f32.mrf.mxu1  ;;  %v796_v17 = vmul.f32 %v723_v3, %v723_v3 }
  0xf8   : > { %590 = vst [vmem:[%s1150_s28] sm:$0xff] %v464_v47  ;;  %v475_v56 = vadd.f32 %v1014_v50, %v1206_v28  ;;  %606 = vst [vmem:[%s1150_s28 + $0x80] sm:$0xff] %v1234_v49  ;;  %v1249_v57 = vadd.f32 %v1030_v55, %v1206_v28  ;;  %v721_v60 = vsel %vm689_vm0, %v464_v47, 0.0 }
  0xf9   : > { %v466_v58 = vpop.f32.mrf.mxu0  ;;  %v530_v59 = vpop.f32.mrf.mxu1  ;;  %v794_v7 = vmul.f32 %v721_v60, %v721_v60 }
  0xfa   : > { %593 = vst [vmem:[%s1150_s28 + $0x18] sm:$0xff] %v475_v56  ;;  %v467_v61 = vadd.f32 %v1206_v28, %v466_v58  ;;  %609 = vst [vmem:[%s1150_s28 + $0x98] sm:$0xff] %v1249_v57  ;;  %v1258_v62 = vadd.f32 %v1206_v28, %v530_v59  ;;  %v724_v13 = vsel %vm692_vm2, %v475_v56, 0.0 }
  0xfb   : > { %v1017_v63 = vpop.f32.mrf.mxu0  ;;  %v1033_v2 = vpop.f32.mrf.mxu1  ;;  %v797_v27 = vmul.f32 %v724_v13, %v724_v13 }
  0xfc   : > { %591 = vst [vmem:[%s1150_s28 + $0x8] sm:$0xff] %v467_v61  ;;  %v722_v4 = vsel %vm690_vm3, %v467_v61, 0.0  ;;  %v488_v5 = vadd.f32 %v1017_v63, %v1206_v28  ;;  %607 = vst [vmem:[%s1150_s28 + $0x88] sm:$0xff] %v1258_v62  ;;  %v1275_v6 = vadd.f32 %v1033_v2, %v1206_v28  ;;  %v638_v61 = vadd.s32 120, %v1199_v26 }
  0xfd   : > { %v754_v8 = vadd.f32 %v722_v4, %v721_v60  ;;  %v795_v9 = vmul.f32 %v722_v4, %v722_v4  ;;  %v479_v10 = vpop.f32.mrf.mxu0  ;;  %v543_v12 = vpop.f32.mrf.mxu1 }
  0xfe   : > { %596 = vst [vmem:[%s1150_s28 + $0x30] sm:$0xff] %v488_v5  ;;  %v480_v14 = vadd.f32 %v1206_v28, %v479_v10  ;;  %612 = vst [vmem:[%s1150_s28 + $0xb0] sm:$0xff] %v1275_v6  ;;  %v1285_v16 = vadd.f32 %v1206_v28, %v543_v12  ;;  %v727_v47 = vsel %vm695_vm4, %v488_v5, 0.0 }
  0xff   : > { %v755_v18 = vadd.f32 %v754_v8, %v723_v3  ;;  %v826_v19 = vadd.f32 %v795_v9, %v794_v7  ;;  %v1018_v20 = vpop.f32.mrf.mxu0  ;;  %v1034_v22 = vpop.f32.mrf.mxu1  ;;  %v800_v2 = vmul.f32 %v727_v47, %v727_v47 }
 0x100   : > { %594 = vst [vmem:[%s1150_s28 + $0x20] sm:$0xff] %v480_v14  ;;  %v725_v23 = vsel %vm693_vm5, %v480_v14, 0.0  ;;  %v491_v24 = vadd.f32 %v1018_v20, %v1206_v28  ;;  %610 = vst [vmem:[%s1150_s28 + $0xa0] sm:$0xff] %v1285_v16  ;;  %v1295_v25 = vadd.f32 %v1034_v22, %v1206_v28  ;;  %v636_v14 = vadd.s32 104, %v1199_v26 }
 0x101   : > { %v827_v30 = vadd.f32 %v826_v19, %v796_v17  ;;  %v756_v31 = vadd.f32 %v755_v18, %v724_v13  ;;  %v482_v32 = vpop.f32.mrf.mxu0  ;;  %v546_v34 = vpop.f32.mrf.mxu1  ;;  %v798_v41 = vmul.f32 %v725_v23, %v725_v23  ;;  %v1353_v17 = vadd.s32 %v1208_v29, %v638_v61 }
 0x102   : > { %597 = vst [vmem:[%s1150_s28 + $0x38] sm:$0xff] %v491_v24  ;;  %v483_v35 = vadd.f32 %v1206_v28, %v482_v32  ;;  %613 = vst [vmem:[%s1150_s28 + $0xb8] sm:$0xff] %v1295_v25  ;;  %v1308_v38 = vadd.f32 %v1206_v28, %v546_v34  ;;  %v728_v52 = vsel %vm696_vm6, %v491_v24, 0.0 }
 0x103   : > { %v757_v39 = vadd.f32 %v756_v31, %v725_v23  ;;  %v828_v42 = vadd.f32 %v827_v30, %v797_v27  ;;  %v1021_v43 = vpop.f32.mrf.mxu0  ;;  %v1037_v46 = vpop.f32.mrf.mxu1  ;;  %v801_v10 = vmul.f32 %v728_v52, %v728_v52  ;;  %v639_v23 = vadd.s32 128, %v1199_v26 }
 0x104   : > { %595 = vst [vmem:[%s1150_s28 + $0x28] sm:$0xff] %v483_v35  ;;  %v726_v48 = vsel %vm694_vm7, %v483_v35, 0.0  ;;  %v504_v50 = vadd.f32 %v1021_v43, %v1206_v28  ;;  %611 = vst [vmem:[%s1150_s28 + $0xa8] sm:$0xff] %v1308_v38  ;;  %v1322_v53 = vadd.f32 %v1037_v46, %v1206_v28  ;;  %v640_v43 = vadd.s32 136, %v1199_v26 }
 0x105   : > { %v829_v54 = vadd.f32 %v828_v42, %v798_v41  ;;  %v758_v55 = vadd.f32 %v757_v39, %v726_v48  ;;  %v799_v56 = vmul.f32 %v726_v48, %v726_v48  ;;  %v495_v58 = vpop.f32.mrf.mxu0  ;;  %v559_v59 = vpop.f32.mrf.mxu1  ;;  %v670_v41 = vadd.s32 %v1208_v29, %v636_v14 }
 0x106   : > { %600 = vst [vmem:[%s1150_s28 + $0x50] sm:$0xff] %v504_v50  ;;  %v496_v60 = vadd.f32 %v1206_v28, %v495_v58  ;;  %616 = vst [vmem:[%s1150_s28 + $0xd0] sm:$0xff] %v1322_v53  ;;  %v1335_v63 = vadd.f32 %v1206_v28, %v559_v59  ;;  %v731_v27 = vsel %vm699_vm9, %v504_v50, 0.0  ;;  %v673_v59 = vadd.s32 %v1208_v29, %v639_v23 }
 0x107   : > { %v759_v3 = vadd.f32 %v758_v55, %v727_v47  ;;  %v830_v4 = vadd.f32 %v829_v54, %v799_v56  ;;  %v1022_v5 = vpop.f32.mrf.mxu0  ;;  %v1038_v51 = vpop.f32.mrf.mxu1  ;;  %v804_v47 = vmul.f32 %v731_v27, %v731_v27  ;;  %v641_v54 = vadd.s32 144, %v1199_v26 }
 0x108   : > { %598 = vst [vmem:[%s1150_s28 + $0x40] sm:$0xff] %v496_v60  ;;  %v729_v7 = vsel %vm697_vm8, %v496_v60, 0.0  ;;  %v507_v8 = vadd.f32 %v1022_v5, %v1206_v28  ;;  %614 = vst [vmem:[%s1150_s28 + $0xc0] sm:$0xff] %v1335_v63  ;;  %v1345_v9 = vadd.f32 %v1038_v51, %v1206_v28  ;;  %vm702_vm14 = vcmp.lt.s32.totalorder %v670_v41, 512 }
 0x109   : > { %v831_v11 = vadd.f32 %v830_v4, %v800_v2  ;;  %v760_v12 = vadd.f32 %v759_v3, %v728_v52  ;;  %v498_v13 = vpop.f32.mrf.mxu0  ;;  %v562_v1 = vpop.f32.mrf.mxu1  ;;  %v802_v20 = vmul.f32 %v729_v7, %v729_v7  ;;  %v642_v5 = vadd.s32 152, %v1199_v26 }
 0x10a   : > { %601 = vst [vmem:[%s1150_s28 + $0x58] sm:$0xff] %v507_v8  ;;  %v499_v15 = vadd.f32 %v1206_v28, %v498_v13  ;;  %617 = vst [vmem:[%s1150_s28 + $0xd8] sm:$0xff] %v1345_v9  ;;  %v1358_v18 = vadd.f32 %v1206_v28, %v562_v1  ;;  %v732_v42 = vsel %vm700_vm10, %v507_v8, 0.0  ;;  %v674_v51 = vadd.s32 %v1208_v29, %v640_v43 }
 0x10b   : > { %v761_v19 = vadd.f32 %v760_v12, %v729_v7  ;;  %v832_v21 = vadd.f32 %v831_v11, %v801_v10  ;;  %v1025_v22 = vpop.f32.mrf.mxu0  ;;  %v1041_v24 = vpop.f32.mrf.mxu1  ;;  %v805_v60 = vmul.f32 %v732_v42, %v732_v42  ;;  %vm704_vm15 = vcmp.lt.s32.totalorder %v1353_v17, 512 }
 0x10c   : > { %599 = vst [vmem:[%s1150_s28 + $0x48] sm:$0xff] %v499_v15  ;;  %v730_v30 = vsel %vm698_vm11, %v499_v15, 0.0  ;;  %v520_v31 = vadd.f32 %v1025_v22, %v1206_v28  ;;  %615 = vst [vmem:[%s1150_s28 + $0xc8] sm:$0xff] %v1358_v18  ;;  %v1369_v32 = vadd.f32 %v1041_v24, %v1206_v28  ;;  %v675_v13 = vadd.s32 %v1208_v29, %v641_v54 }
 0x10d   : > { %v833_v33 = vadd.f32 %v832_v21, %v802_v20  ;;  %v762_v34 = vadd.f32 %v761_v19, %v730_v30  ;;  %v803_v35 = vmul.f32 %v730_v30, %v730_v30  ;;  %v511_v39 = vpop.f32.mrf.mxu0  ;;  %v575_v0 = vpop.f32.mrf.mxu1  ;;  %vm705_vm0 = vcmp.lt.s32.totalorder %v673_v59, 512 }
 0x10e   : > { %604 = vst [vmem:[%s1150_s28 + $0x70] sm:$0xff] %v520_v31  ;;  %v512_v37 = vadd.f32 %v1206_v28, %v511_v39  ;;  %620 = vst [vmem:[%s1150_s28 + $0xf0] sm:$0xff] %v1369_v32  ;;  %v1380_v46 = vadd.f32 %v1206_v28, %v575_v0  ;;  %v735_v12 = vsel %vm703_vm12, %v520_v31, 0.0  ;;  %v643_v19 = vadd.s32 160, %v1199_v26 }
 0x10f   : > { %v763_v48 = vadd.f32 %v762_v34, %v731_v27  ;;  %v834_v50 = vadd.f32 %v833_v33, %v803_v35  ;;  %v1026_v55 = vpop.f32.mrf.mxu0  ;;  %v1042_v36 = vpop.f32.mrf.mxu1  ;;  %v676_v21 = vadd.s32 %v1208_v29, %v642_v5  ;;  %vm706_vm1 = vcmp.lt.s32.totalorder %v674_v51, 512 }
 0x110   : > { %602 = vst [vmem:[%s1150_s28 + $0x60] sm:$0xff] %v512_v37  ;;  %v733_v56 = vsel %vm701_vm13, %v512_v37, 0.0  ;;  %v523_v58 = vadd.f32 %v1026_v55, %v1206_v28  ;;  %618 = vst [vmem:[%s1150_s28 + $0xe0] sm:$0xff] %v1380_v46  ;;  %v1391_v52 = vadd.f32 %v1042_v36, %v1206_v28  ;;  %v808_v17 = vmul.f32 %v735_v12, %v735_v12 }
 0x111   : > { %v835_v61 = vadd.f32 %v834_v50, %v804_v47  ;;  %v764_v2 = vadd.f32 %v763_v48, %v732_v42  ;;  %v514_v3 = vpop.f32.mrf.mxu0  ;;  %v578_v4 = vpop.f32.mrf.mxu1  ;;  %v806_v10 = vmul.f32 %v733_v56, %v733_v56  ;;  %v644_v23 = vadd.s32 168, %v1199_v26 }
 0x112   : > { %605 = vst [vmem:[%s1150_s28 + $0x78] sm:$0xff] %v523_v58  ;;  %v515_v45 = vadd.f32 %v1206_v28, %v514_v3  ;;  %621 = vst [vmem:[%s1150_s28 + $0xf8] sm:$0xff] %v1391_v52  ;;  %v1400_v7 = vadd.f32 %v1206_v28, %v578_v4  ;;  %v736_v20 = vsel %vm704_vm15, %v523_v58, 0.0  ;;  %vm707_vm2 = vcmp.lt.s32.totalorder %v675_v13, 512 }
 0x113   : > { %v765_v8 = vadd.f32 %v764_v2, %v733_v56  ;;  %v836_v11 = vadd.f32 %v835_v61, %v805_v60  ;;  %v737_v24 = vsel %vm705_vm0, %v1234_v49, 0.0  ;;  %v645_v27 = vadd.s32 176, %v1199_v26 }
 0x114   : > { %603 = vst [vmem:[%s1150_s28 + $0x68] sm:$0xff] %v515_v45  ;;  %v734_v14 = vsel %vm702_vm14, %v515_v45, 0.0  ;;  %619 = vst [vmem:[%s1150_s28 + $0xe8] sm:$0xff] %v1400_v7  ;;  %v809_v30 = vmul.f32 %v736_v20, %v736_v20  ;;  %v677_v34 = vadd.s32 %v1208_v29, %v643_v19  ;;  %vm708_vm3 = vcmp.lt.s32.totalorder %v676_v21, 512 }
 0x115   : > { %v837_v1 = vadd.f32 %v836_v11, %v806_v10  ;;  %v766_v15 = vadd.f32 %v765_v8, %v734_v14  ;;  %v807_v28 = vmul.f32 %v734_v14, %v734_v14  ;;  %v738_v35 = vsel %vm706_vm1, %v1258_v62, 0.0 }
 0x116   : > { %v646_v39 = vadd.s32 184, %v1199_v26  ;;  %v810_v41 = vmul.f32 %v737_v24, %v737_v24  ;;  %v678_v37 = vadd.s32 %v1208_v29, %v644_v23  ;;  %v739_v43 = vsel %vm707_vm2, %v1220_v40, 0.0 }
 0x117   : > { %v767_v44 = vadd.f32 %v766_v15, %v735_v12  ;;  %v838_v22 = vadd.f32 %v837_v1, %v807_v28  ;;  %v679_v49 = vadd.s32 %v1208_v29, %v645_v27  ;;  %v647_v47 = vadd.s32 192, %v1199_v26 }
 0x118   : > { %v811_v50 = vmul.f32 %v738_v35, %v738_v35  ;;  %vm709_vm4 = vcmp.lt.s32.totalorder %v677_v34, 512  ;;  %v740_v55 = vsel %vm708_vm3, %v1249_v57, 0.0  ;;  %v680_v62 = vadd.s32 %v1208_v29, %v646_v39 }
 0x119   : > { %v839_v31 = vadd.f32 %v838_v22, %v808_v17  ;;  %v768_v33 = vadd.f32 %v767_v44, %v736_v20  ;;  %v648_v36 = vadd.s32 200, %v1199_v26  ;;  %v812_v56 = vmul.f32 %v739_v43, %v739_v43 }
 0x11a   : > { %vm710_vm5 = vcmp.lt.s32.totalorder %v678_v37, 512  ;;  %v741_v40 = vsel %vm709_vm4, %v1285_v16, 0.0  ;;  %v649_v60 = vadd.s32 208, %v1199_v26  ;;  %v681_v61 = vadd.s32 %v1208_v29, %v647_v47 }
 0x11b   : > { %v769_v0 = vadd.f32 %v768_v33, %v737_v24  ;;  %v840_v42 = vadd.f32 %v839_v31, %v809_v30  ;;  %v813_v2 = vmul.f32 %v740_v55, %v740_v55  ;;  %vm711_vm6 = vcmp.lt.s32.totalorder %v679_v49, 512 }
 0x11c   : > { %v742_v57 = vsel %vm710_vm5, %v1308_v38, 0.0  ;;  %v650_v45 = vadd.s32 216, %v1199_v26  ;;  %v682_v5 = vadd.s32 %v1208_v29, %v648_v36  ;;  %v814_v8 = vmul.f32 %v741_v40, %v741_v40 }
 0x11d   : > { %v770_v48 = vadd.f32 %v769_v0, %v738_v35  ;;  %v841_v54 = vadd.f32 %v840_v42, %v810_v41  ;;  %vm712_vm7 = vcmp.lt.s32.totalorder %v680_v62, 512  ;;  %v743_v16 = vsel %vm711_vm6, %v1275_v6, 0.0 }
 0x11e   : > { %v683_v11 = vadd.s32 %v1208_v29, %v649_v60  ;;  %vm713_vm8 = vcmp.lt.s32.totalorder %v681_v61, 512  ;;  %v815_v14 = vmul.f32 %v742_v57, %v742_v57  ;;  %v651_v1 = vadd.s32 224, %v1199_v26 }
 0x11f   : > { %v771_v58 = vadd.f32 %v770_v48, %v739_v43  ;;  %v842_v59 = vadd.f32 %v841_v54, %v811_v50  ;;  %v744_v38 = vsel %vm712_vm7, %v1295_v25, 0.0  ;;  %v684_v15 = vadd.s32 %v1208_v29, %v650_v45 }
 0x120   : > { %vm714_vm9 = vcmp.lt.s32.totalorder %v682_v5, 512  ;;  %v816_v28 = vmul.f32 %v743_v16, %v743_v16  ;;  %v652_v21 = vadd.s32 232, %v1199_v26  ;;  %vm715_vm10 = vcmp.lt.s32.totalorder %v683_v11, 512 }
 0x121   : > { %v843_v3 = vadd.f32 %v842_v59, %v812_v56  ;;  %v772_v4 = vadd.f32 %v771_v58, %v740_v55  ;;  %v745_v6 = vsel %vm713_vm8, %v1335_v63, 0.0  ;;  %v653_v17 = vadd.s32 240, %v1199_v26 }
 0x122   : > { %v817_v44 = vmul.f32 %v744_v38, %v744_v38  ;;  %v685_v24 = vadd.s32 %v1208_v29, %v651_v1  ;;  %vm716_vm11 = vcmp.lt.s32.totalorder %v684_v15, 512  ;;  %v746_v25 = vsel %vm714_vm9, %v1358_v18, 0.0 }
 0x123   : > { %v773_v51 = vadd.f32 %v772_v4, %v741_v40  ;;  %v844_v10 = vadd.f32 %v843_v3, %v813_v2  ;;  %v654_v27 = vadd.s32 248, %v1199_v26  ;;  %v818_v31 = vmul.f32 %v745_v6, %v745_v6 }
 0x124   : > { %v686_v34 = vadd.s32 %v1208_v29, %v652_v21  ;;  %v747_v35 = vsel %vm715_vm10, %v1322_v53, 0.0  ;;  %v687_v63 = vadd.s32 %v1208_v29, %v653_v17  ;;  %v819_v0 = vmul.f32 %v746_v25, %v746_v25 }
 0x125   : > { %v845_v12 = vadd.f32 %v844_v10, %v814_v8  ;;  %v774_v13 = vadd.f32 %v773_v51, %v742_v57  ;;  %vm717_vm12 = vcmp.lt.s32.totalorder %v685_v24, 512  ;;  %v748_v42 = vsel %vm716_vm11, %v1345_v9, 0.0 }
 0x126   : > { %v688_v37 = vadd.s32 %v1208_v29, %v654_v27  ;;  %v820_v18 = vmul.f32 %v747_v35, %v747_v35  ;;  %vm718_vm13 = vcmp.lt.s32.totalorder %v686_v34, 512  ;;  %v749_v49 = vsel %vm717_vm12, %v1380_v46, 0.0 }
 0x127   : > { %v775_v19 = vadd.f32 %v774_v13, %v743_v16  ;;  %v846_v20 = vadd.f32 %v845_v12, %v815_v14  ;;  %v821_v47 = vmul.f32 %v748_v42, %v748_v42  ;;  %vm719_vm14 = vcmp.lt.s32.totalorder %v687_v63, 512  ;;  %v793_v12 = vld [vmem:[%s1472_s5] sm:$0x1] }
 0x128   : > { %v750_v50 = vsel %vm718_vm13, %v1400_v7, 0.0  ;;  %v822_v55 = vmul.f32 %v749_v49, %v749_v49  ;;  %vm720_vm15 = vcmp.lt.s32.totalorder %v688_v37, 512  ;;  %v751_v9 = vsel %vm719_vm14, %v1369_v32, 0.0 }
 0x129   : > { %v847_v22 = vadd.f32 %v846_v20, %v816_v28  ;;  %v776_v23 = vadd.f32 %v775_v19, %v744_v38  ;;  %v823_v56 = vmul.f32 %v750_v50, %v750_v50  ;;  %v752_v58 = vsel %vm720_vm15, %v1391_v52, 0.0  ;;  %v753_v52 = vld [vmem:[%s1471_s4] sm:$0x1] }
 0x12a   : > { %v824_v59 = vmul.f32 %v751_v9, %v751_v9  ;;  %v825_v60 = vmul.f32 %v752_v58, %v752_v58 }
 0x12b   : > { %v777_v30 = vadd.f32 %v776_v23, %v745_v6  ;;  %v848_v33 = vadd.f32 %v847_v22, %v817_v44 }
 0x12d   : > { %v849_v39 = vadd.f32 %v848_v33, %v818_v31  ;;  %v778_v41 = vadd.f32 %v777_v30, %v746_v25 }
 0x12f   : > { %v779_v43 = vadd.f32 %v778_v41, %v747_v35  ;;  %v850_v26 = vadd.f32 %v849_v39, %v819_v0 }
 0x131   : > { %v851_v48 = vadd.f32 %v850_v26, %v820_v18  ;;  %v780_v53 = vadd.f32 %v779_v43, %v748_v42 }
 0x133   : > { %v781_v54 = vadd.f32 %v780_v53, %v749_v49  ;;  %v852_v62 = vadd.f32 %v851_v48, %v821_v47 }
 0x135   : > { %v853_v36 = vadd.f32 %v852_v62, %v822_v55  ;;  %v782_v29 = vadd.f32 %v781_v54, %v750_v50 }
 0x137   : > { %v783_v40 = vadd.f32 %v782_v29, %v751_v9  ;;  %v854_v46 = vadd.f32 %v853_v36, %v823_v56 }
 0x139   : > { %v784_v61 = vadd.f32 %v783_v40, %v752_v58  ;;  %v855_v2 = vadd.f32 %v854_v46, %v824_v59 }
 0x13b   : > { %v785_v3 = vrot.slane %v784_v61, 4  ;;  %v856_v4 = vadd.f32 %v855_v2, %v825_v60 }
 0x13d   : > { %v786_v7 = vadd.f32 %v785_v3, %v784_v61  ;;  %v857_v57 = vrot.slane %v856_v4, 4 }
 0x13f   : > { %v787_v45 = vrot.slane %v786_v7, 2  ;;  %v858_v5 = vadd.f32 %v857_v57, %v856_v4 }
 0x141   : > { %v788_v51 = vadd.f32 %v787_v45, %v786_v7  ;;  %v859_v8 = vrot.slane %v858_v5, 2 }
 0x143   : > { %v789_v32 = vrot.slane %v788_v51, 1  ;;  %v860_v10 = vadd.f32 %v859_v8, %v858_v5 }
 0x145   : > { %v790_v16 = vadd.f32 %v789_v32, %v788_v51  ;;  %v861_v11 = vrot.slane %v860_v10, 1 }
 0x147   : > { %v791_v13 = vadd.f32 %v790_v16, %v753_v52  ;;  %v862_v14 = vadd.f32 %v861_v11, %v860_v10 }
 0x149   : > { %792 = vst [vmem:[%s1471_s4] sm:$0x1] %v791_v13  ;;  %v863_v1 = vadd.f32 %v862_v14, %v793_v12 }
 0x14b   : > { %864 = vst [vmem:[%s1472_s5] sm:$0x1] %v863_v1 }
 0x14c PF: > { %s16_s18 = sadd.s32 1, %s1098_s18  }
 0x14d   : > { %p13_p5 = scmp.ge.s32.totalorder %s16_s18, 4  }
 0x14f   :  { %15 = sbr.rel (!%p13_p5) target bundleno = 1 (0x1), region = 82 }

// kernel: double_conv2d_bn_forward.7
= control target key start
LH: loop header
LB: loop body
LE: loop exit
PB: predicated region body
PF: predicated region fallthrough
CT: control target
= control target key end

     0   :  { %s453_s12 = smov 0   ;;  %s612_s0 = inlined_call_operand.vmem [shape: f32[512,128], index: 0, kind: input, shape index: {}]   ;;  %s613_s1 = inlined_call_operand.vmem [shape: f32[1,128], index: 1, kind: input, shape index: {}]   ;;  %s614_s2 = inlined_call_operand.vmem [shape: f32[1,128], index: 2, kind: input, shape index: {}]   ;;  %s615_s3 = inlined_call_operand.vmem [shape: f32[512,128], index: 3, kind: output, shape index: {}]  }
   0x1 LB: > { %s404_s13 = sadd.s32 4294967295, %s431_s12   ;;  %p408_p0 = scmp.ge.s32.totalorder %s431_s12, 1  ;;  %s431_s12 = sphi %s453_s12, %s13_s12  }
   0x2   : > { %p138_p1 = scmp.lt.s32.totalorder %s431_s12, 3 }
   0x4   : > { %p139_p2 = pnand %p408_p0, %p138_p1 }
   0x5   : > { %s409_s14 = sshll.u32 (!%p139_p2), %s404_s13, 5 }
   0x6   : > { %142 = sbr.rel (%p139_p2) target bundleno = 44 (0x2c), region = 32  ;;  %p163_p3 = scmp.lt.s32.totalorder (!%p139_p2), %s409_s14, 63 }
   0xb   : > { %s617_s14 = smov (!%p163_p3, %s409_s14), 63  ;;  %v464_v0 = vld [vmem:[%s613_s1] ss:$0 sm:$0xff] }
   0xc   : > { %s410_s15 = sshll.u32 %s617_s14, 3  ;;  %v474_v1 = vld [vmem:[%s614_s2] ss:$0 sm:$0xff] }
   0xd   : > { %s469_s20 = scalar_lea.vmem %s612_s0, %s410_s15  ;;  %s497_s25 = scalar_lea.vmem %s615_s3, %s410_s15 }
   0xe   : > { %v174_v2 = vld [vmem:[%s469_s20] sm:$0xff]  ;;  %v175_v3 = vld [vmem:[%s469_s20 + $0x8] sm:$0xff]  ;;  %v176_v4 = vld [vmem:[%s469_s20 + $0x10] sm:$0xff] }
   0xf   : > { %v213_v5 = vmul.f32 %v464_v0, %v174_v2  ;;  %v214_v6 = vmul.f32 %v464_v0, %v175_v3  ;;  %v215_v7 = vmul.f32 %v464_v0, %v176_v4  ;;  %v177_v8 = vld [vmem:[%s469_s20 + $0x18] sm:$0xff]  ;;  %v178_v9 = vld [vmem:[%s469_s20 + $0x20] sm:$0xff]  ;;  %v179_v10 = vld [vmem:[%s469_s20 + $0x28] sm:$0xff] }
  0x10   : > { %v216_v11 = vmul.f32 %v464_v0, %v177_v8  ;;  %v217_v12 = vmul.f32 %v464_v0, %v178_v9  ;;  %v218_v13 = vmul.f32 %v464_v0, %v179_v10  ;;  %v180_v14 = vld [vmem:[%s469_s20 + $0x30] sm:$0xff]  ;;  %v181_v15 = vld [vmem:[%s469_s20 + $0x38] sm:$0xff]  ;;  %v182_v24 = vld [vmem:[%s469_s20 + $0x40] sm:$0xff] }
  0x11   : > { %v252_v16 = vadd.f32 %v474_v1, %v213_v5  ;;  %v253_v17 = vadd.f32 %v474_v1, %v214_v6  ;;  %v254_v18 = vadd.f32 %v474_v1, %v215_v7  ;;  %v219_v19 = vmul.f32 %v464_v0, %v180_v14  ;;  %v183_v25 = vld [vmem:[%s469_s20 + $0x48] sm:$0xff]  ;;  %v184_v26 = vld [vmem:[%s469_s20 + $0x50] sm:$0xff]  ;;  %v185_v31 = vld [vmem:[%s469_s20 + $0x58] sm:$0xff] }
  0x12   : > { %v255_v20 = vadd.f32 %v474_v1, %v216_v11  ;;  %v256_v21 = vadd.f32 %v474_v1, %v217_v12  ;;  %v257_v22 = vadd.f32 %v474_v1, %v218_v13  ;;  %v220_v23 = vmul.f32 %v464_v0, %v181_v15  ;;  %v186_v32 = vld [vmem:[%s469_s20 + $0x60] sm:$0xff]  ;;  %v187_v33 = vld [vmem:[%s469_s20 + $0x68] sm:$0xff]  ;;  %v188_v38 = vld [vmem:[%s469_s20 + $0x70] sm:$0xff] }
  0x13   : > { %v284_v27 = vmax.f32 %v252_v16, 0.0  ;;  %v285_v28 = vmax.f32 %v253_v17, 0.0  ;;  %v286_v29 = vmax.f32 %v254_v18, 0.0  ;;  %v258_v30 = vadd.f32 %v474_v1, %v219_v19  ;;  %v189_v43 = vld [vmem:[%s469_s20 + $0x78] sm:$0xff]  ;;  %v190_v56 = vld [vmem:[%s469_s20 + $0x80] sm:$0xff]  ;;  %v191_v57 = vld [vmem:[%s469_s20 + $0x88] sm:$0xff] }
  0x14   : > { %v287_v34 = vmax.f32 %v255_v20, 0.0  ;;  %v288_v35 = vmax.f32 %v256_v21, 0.0  ;;  %v289_v36 = vmax.f32 %v257_v22, 0.0  ;;  %v259_v37 = vadd.f32 %v474_v1, %v220_v23  ;;  %v192_v58 = vld [vmem:[%s469_s20 + $0x90] sm:$0xff]  ;;  %v193_v63 = vld [vmem:[%s469_s20 + $0x98] sm:$0xff]  ;;  %v194_v2 = vld [vmem:[%s469_s20 + $0xa0] sm:$0xff] }
  0x15   : > { %316 = vst [vmem:[%s497_s25] sm:$0xff] %v284_v27  ;;  %317 = vst [vmem:[%s497_s25 + $0x8] sm:$0xff] %v285_v28  ;;  %v290_v39 = vmax.f32 %v258_v30, 0.0  ;;  %v221_v40 = vmul.f32 %v464_v0, %v182_v24  ;;  %v222_v41 = vmul.f32 %v464_v0, %v183_v25  ;;  %v223_v42 = vmul.f32 %v464_v0, %v184_v26  ;;  %v195_v3 = vld [vmem:[%s469_s20 + $0xa8] sm:$0xff]  ;;  %v196_v8 = vld [vmem:[%s469_s20 + $0xb0] sm:$0xff] }
  0x16   : > { %318 = vst [vmem:[%s497_s25 + $0x10] sm:$0xff] %v286_v29  ;;  %319 = vst [vmem:[%s497_s25 + $0x18] sm:$0xff] %v287_v34  ;;  %v291_v44 = vmax.f32 %v259_v37, 0.0  ;;  %v224_v45 = vmul.f32 %v464_v0, %v185_v31  ;;  %v225_v46 = vmul.f32 %v464_v0, %v186_v32  ;;  %v226_v47 = vmul.f32 %v464_v0, %v187_v33  ;;  %v197_v13 = vld [vmem:[%s469_s20 + $0xb8] sm:$0xff]  ;;  %v198_v26 = vld [vmem:[%s469_s20 + $0xc0] sm:$0xff] }
  0x17   : > { %320 = vst [vmem:[%s497_s25 + $0x20] sm:$0xff] %v288_v35  ;;  %321 = vst [vmem:[%s497_s25 + $0x28] sm:$0xff] %v289_v36  ;;  %v260_v48 = vadd.f32 %v474_v1, %v221_v40  ;;  %v261_v49 = vadd.f32 %v474_v1, %v222_v41  ;;  %v262_v50 = vadd.f32 %v474_v1, %v223_v42  ;;  %v199_v27 = vld [vmem:[%s469_s20 + $0xc8] sm:$0xff]  ;;  %v200_v28 = vld [vmem:[%s469_s20 + $0xd0] sm:$0xff] }
  0x18   : > { %322 = vst [vmem:[%s497_s25 + $0x30] sm:$0xff] %v290_v39  ;;  %v227_v51 = vmul.f32 %v464_v0, %v188_v38  ;;  %323 = vst [vmem:[%s497_s25 + $0x38] sm:$0xff] %v291_v44  ;;  %v263_v52 = vadd.f32 %v474_v1, %v224_v45  ;;  %v264_v53 = vadd.f32 %v474_v1, %v225_v46  ;;  %v201_v33 = vld [vmem:[%s469_s20 + $0xd8] sm:$0xff]  ;;  %v202_v34 = vld [vmem:[%s469_s20 + $0xe0] sm:$0xff] }
  0x19   : > { %v265_v54 = vadd.f32 %v474_v1, %v226_v47  ;;  %v228_v55 = vmul.f32 %v464_v0, %v189_v43  ;;  %v292_v59 = vmax.f32 %v260_v48, 0.0  ;;  %v293_v60 = vmax.f32 %v261_v49, 0.0  ;;  %v203_v35 = vld [vmem:[%s469_s20 + $0xe8] sm:$0xff]  ;;  %v204_v40 = vld [vmem:[%s469_s20 + $0xf0] sm:$0xff]  ;;  %v205_v45 = vld [vmem:[%s469_s20 + $0xf8] sm:$0xff] }
  0x1a   : > { %v294_v61 = vmax.f32 %v262_v50, 0.0  ;;  %v266_v62 = vadd.f32 %v474_v1, %v227_v51  ;;  %v295_v4 = vmax.f32 %v263_v52, 0.0  ;;  %v296_v5 = vmax.f32 %v264_v53, 0.0 }
  0x1b   : > { %v297_v6 = vmax.f32 %v265_v54, 0.0  ;;  %v267_v7 = vadd.f32 %v474_v1, %v228_v55  ;;  %324 = vst [vmem:[%s497_s25 + $0x40] sm:$0xff] %v292_v59  ;;  %325 = vst [vmem:[%s497_s25 + $0x48] sm:$0xff] %v293_v60  ;;  %v229_v10 = vmul.f32 %v464_v0, %v190_v56  ;;  %v230_v11 = vmul.f32 %v464_v0, %v191_v57 }
  0x1c   : > { %326 = vst [vmem:[%s497_s25 + $0x50] sm:$0xff] %v294_v61  ;;  %v298_v9 = vmax.f32 %v266_v62, 0.0  ;;  %v231_v12 = vmul.f32 %v464_v0, %v192_v58  ;;  %327 = vst [vmem:[%s497_s25 + $0x58] sm:$0xff] %v295_v4  ;;  %v232_v15 = vmul.f32 %v464_v0, %v193_v63  ;;  %v233_v16 = vmul.f32 %v464_v0, %v194_v2 }
  0x1d   : > { %328 = vst [vmem:[%s497_s25 + $0x60] sm:$0xff] %v296_v5  ;;  %329 = vst [vmem:[%s497_s25 + $0x68] sm:$0xff] %v297_v6  ;;  %v299_v14 = vmax.f32 %v267_v7, 0.0  ;;  %v234_v17 = vmul.f32 %v464_v0, %v195_v3  ;;  %v268_v18 = vadd.f32 %v474_v1, %v229_v10  ;;  %v269_v19 = vadd.f32 %v474_v1, %v230_v11 }
  0x1e   : > { %330 = vst [vmem:[%s497_s25 + $0x70] sm:$0xff] %v298_v9  ;;  %v270_v20 = vadd.f32 %v474_v1, %v231_v12  ;;  %v235_v21 = vmul.f32 %v464_v0, %v196_v8  ;;  %v271_v22 = vadd.f32 %v474_v1, %v232_v15  ;;  %v272_v23 = vadd.f32 %v474_v1, %v233_v16 }
  0x1f   : > { %331 = vst [vmem:[%s497_s25 + $0x78] sm:$0xff] %v299_v14  ;;  %v273_v24 = vadd.f32 %v474_v1, %v234_v17  ;;  %v236_v25 = vmul.f32 %v464_v0, %v197_v13  ;;  %v300_v29 = vmax.f32 %v268_v18, 0.0  ;;  %v301_v30 = vmax.f32 %v269_v19, 0.0 }
  0x20   : > { %v302_v31 = vmax.f32 %v270_v20, 0.0  ;;  %v274_v32 = vadd.f32 %v474_v1, %v235_v21  ;;  %v303_v36 = vmax.f32 %v271_v22, 0.0  ;;  %v304_v37 = vmax.f32 %v272_v23, 0.0 }
  0x21   : > { %v305_v38 = vmax.f32 %v273_v24, 0.0  ;;  %v275_v39 = vadd.f32 %v474_v1, %v236_v25  ;;  %332 = vst [vmem:[%s497_s25 + $0x80] sm:$0xff] %v300_v29  ;;  %333 = vst [vmem:[%s497_s25 + $0x88] sm:$0xff] %v301_v30  ;;  %v237_v42 = vmul.f32 %v464_v0, %v198_v26  ;;  %v238_v43 = vmul.f32 %v464_v0, %v199_v27 }
  0x22   : > { %334 = vst [vmem:[%s497_s25 + $0x90] sm:$0xff] %v302_v31  ;;  %v306_v41 = vmax.f32 %v274_v32, 0.0  ;;  %v239_v44 = vmul.f32 %v464_v0, %v200_v28  ;;  %335 = vst [vmem:[%s497_s25 + $0x98] sm:$0xff] %v303_v36  ;;  %v240_v47 = vmul.f32 %v464_v0, %v201_v33  ;;  %v241_v48 = vmul.f32 %v464_v0, %v202_v34 }
  0x23   : > { %336 = vst [vmem:[%s497_s25 + $0xa0] sm:$0xff] %v304_v37  ;;  %337 = vst [vmem:[%s497_s25 + $0xa8] sm:$0xff] %v305_v38  ;;  %v307_v46 = vmax.f32 %v275_v39, 0.0  ;;  %v242_v49 = vmul.f32 %v464_v0, %v203_v35  ;;  %v276_v50 = vadd.f32 %v474_v1, %v237_v42  ;;  %v277_v51 = vadd.f32 %v474_v1, %v238_v43 }
  0x24   : > { %338 = vst [vmem:[%s497_s25 + $0xb0] sm:$0xff] %v306_v41  ;;  %v278_v52 = vadd.f32 %v474_v1, %v239_v44  ;;  %v243_v53 = vmul.f32 %v464_v0, %v204_v40  ;;  %v279_v54 = vadd.f32 %v474_v1, %v240_v47  ;;  %v280_v55 = vadd.f32 %v474_v1, %v241_v48 }
  0x25   : > { %339 = vst [vmem:[%s497_s25 + $0xb8] sm:$0xff] %v307_v46  ;;  %v281_v56 = vadd.f32 %v474_v1, %v242_v49  ;;  %v244_v57 = vmul.f32 %v464_v0, %v205_v45  ;;  %v308_v58 = vmax.f32 %v276_v50, 0.0  ;;  %v309_v59 = vmax.f32 %v277_v51, 0.0 }
  0x26   : > { %v310_v60 = vmax.f32 %v278_v52, 0.0  ;;  %v282_v61 = vadd.f32 %v474_v1, %v243_v53  ;;  %v311_v62 = vmax.f32 %v279_v54, 0.0  ;;  %v312_v63 = vmax.f32 %v280_v55, 0.0 }
  0x27   : > { %v313_v2 = vmax.f32 %v281_v56, 0.0  ;;  %v283_v3 = vadd.f32 %v474_v1, %v244_v57  ;;  %340 = vst [vmem:[%s497_s25 + $0xc0] sm:$0xff] %v308_v58  ;;  %341 = vst [vmem:[%s497_s25 + $0xc8] sm:$0xff] %v309_v59 }
  0x28   : > { %342 = vst [vmem:[%s497_s25 + $0xd0] sm:$0xff] %v310_v60  ;;  %v314_v4 = vmax.f32 %v282_v61, 0.0  ;;  %343 = vst [vmem:[%s497_s25 + $0xd8] sm:$0xff] %v311_v62 }
  0x29   : > { %344 = vst [vmem:[%s497_s25 + $0xe0] sm:$0xff] %v312_v63  ;;  %345 = vst [vmem:[%s497_s25 + $0xe8] sm:$0xff] %v313_v2  ;;  %v315_v0 = vmax.f32 %v283_v3, 0.0 }
  0x2a   : > { %346 = vst [vmem:[%s497_s25 + $0xf0] sm:$0xff] %v314_v4 }
  0x2b   : > { %347 = vst [vmem:[%s497_s25 + $0xf8] sm:$0xff] %v315_v0 }
  0x2c PF: > { %s13_s12 = sadd.s32 1, %s431_s12  }
  0x2d   : > { %p10_p4 = scmp.ge.s32.totalorder %s13_s12, 4  }
  0x2f   :  { %12 = sbr.rel (!%p10_p4) target bundleno = 1 (0x1), region = 62 }

</bundles_post_ra>
